<compile_context>
chip_gen: v5e
topology: v5e:2x2
jax: 0.10.0
libtpu: 0.0.40
codegen_flags: <defaults>
</compile_context>

<pallas_src>
import functools

import jax
import jax.numpy as jnp
from jax.experimental import pallas as pl
from jax.experimental.pallas import tpu as pltpu


# ----------------------------------------------------------------------------- kernel
def _mlp_policy_kernel(tanh_out,
                       x_ref, gn_ref,
                       w_s1_ref, w_s2_ref, w3_ref, tail_ref,
                       act_ref, comm_ref):
    H = w3_ref.shape[0]           # hidden_dim
    HC = w_s2_ref.shape[1]        # hidden_dim + comm_dim
    C = HC - H                    # comm_dim
    H2 = w_s1_ref.shape[1]        # 2 * hidden_dim

    x = x_ref[...]                                    # (TB, Din) f32
    xb = x.astype(jnp.bfloat16)

    tail = tail_ref[...]                              # (5, W) f32
    b_s1 = tail[0:1, 0:H2]                            # (1, 2H)   [b1 | bc1]
    b_s2 = tail[1:2, 0:HC]                            # (1, H+C)  [b2 | bc2]
    b3 = tail[2:3, 0:2]                               # (1, 2)
    wc3 = tail[3:4, 0:2]                              # (1, 2)    fc_comm3 weight
    bc3 = tail[4:5, 0:2]                              # (1, 2)    fc_comm3 bias

    # ---- stage 1: [h1 | h1_comm] = relu(X @ [W1 | Wc1] + [b1 | bc1]) ----
    hs1 = jnp.dot(xb, w_s1_ref[...], preferred_element_type=jnp.float32) + b_s1
    hs1 = jnp.maximum(hs1, 0.0)                       # (TB, 2H) f32

    # ---- stage 2: block-diag weight -> [h2 | h2_comm] ----
    hs2 = jnp.dot(hs1.astype(jnp.bfloat16), w_s2_ref[...],
                  preferred_element_type=jnp.float32) + b_s2
    hs2 = jnp.maximum(hs2, 0.0)                       # (TB, H + C) f32
    h2 = hs2[:, :H]                                   # (TB, H)
    h2c = hs2[:, H:HC]                                # (TB, C)

    # ---- action head: fc3 (identity or tanh output depending on constrain_out) ----
    out_act = jnp.dot(h2.astype(jnp.bfloat16), w3_ref[...],
                      preferred_element_type=jnp.float32) + b3       # (TB, 2)
    if tanh_out:
        out_act = jnp.tanh(out_act)

    # ---- comm head: fc_comm3 = Linear(1, 2) applied per comm channel, tanh,
    #      hard gumbel-softmax over {0,1}, then @ bin([0,1]) == indicator(argmax==1).
    t0 = jnp.tanh(h2c * wc3[:, 0:1] + bc3[:, 0:1])    # (TB, C) f32
    t1 = jnp.tanh(h2c * wc3[:, 1:2] + bc3[:, 1:2])    # (TB, C) f32
    gn = gn_ref[...]                                  # (TB, 2C) f32
    g0 = gn[:, 0:C]
    g1 = gn[:, C:2 * C]
    out_comm = jnp.where(t1 + g1 > t0 + g0, 1.0, 0.0)  # (TB, C) in {0,1}

    act_ref[...] = out_act.astype(act_ref.dtype)
    comm_ref[...] = out_comm.astype(comm_ref.dtype)


# ----------------------------------------------------------------------------- wrapper
def mlp_policy_forward(X, gumbel_noise, packed_params, *, tanh_out=False):
    """X: (B, input_dim) f32; gumbel_noise: (B, 2*comm_dim) f32.
    Returns (out_act (B, 2), out_comm (B, comm_dim))."""
    w_s1, w_s2, w3, tail = packed_params
    B, Din = X.shape
    H = w3.shape[0]
    HC = w_s2.shape[1]
    C = HC - H
    assert gumbel_noise.shape == (B, 2 * C)

    # Row tile: multiple of 8 sublanes; 512-row tiles for large batches
    # (pipelined double-buffering), single tile otherwise.
    if B >= 512:
        TB = 512
    else:
        TB = ((B + 7) // 8) * 8
    PB = ((B + TB - 1) // TB) * TB
    if PB != B:
        X = jnp.pad(X, ((0, PB - B), (0, 0)))
        gumbel_noise = jnp.pad(gumbel_noise, ((0, PB - B), (0, 0)))

    grid = (PB // TB,)

    def row_spec(cols):
        return pl.BlockSpec((TB, cols), lambda i: (i, 0))

    def full_spec(arr):
        return pl.BlockSpec(arr.shape, lambda i: (0, 0))

    kernel = functools.partial(_mlp_policy_kernel, tanh_out)

    out_act, out_comm = pl.pallas_call(
        kernel,
        grid=grid,
        in_specs=[row_spec(Din), row_spec(2 * C),
                  full_spec(w_s1), full_spec(w_s2), full_spec(w3), full_spec(tail)],
        out_specs=[pl.BlockSpec((TB, 2), lambda i: (i, 0)),
                   pl.BlockSpec((TB, C), lambda i: (i, 0))],
        out_shape=(jax.ShapeDtypeStruct((PB, 2), jnp.float32),
                   jax.ShapeDtypeStruct((PB, C), jnp.float32)),
        compiler_params=pltpu.CompilerParams(
            dimension_semantics=("parallel",),          # v7x: shard batch over 2 TCs
            vmem_limit_bytes=32 * 1024 * 1024),          # fits v7x's smaller VMEM
    )(X, gumbel_noise, w_s1, w_s2, w3, tail)
    return out_act[:B], out_comm[:B]


# ----------------------------------------------------------------------------- params
def init_params(key, input_dim, hidden_dim, comm_dim):
    """Raw per-layer params (PyTorch nn.Linear default init), stored transposed:
    weights (in_features, out_features), biases (out_features,)."""
    ks = jax.random.split(key, 12)

    def linear(kw, kb, fan_in, fan_out):
        bound = 1.0 / (fan_in ** 0.5)
        w = jax.random.uniform(kw, (fan_in, fan_out), jnp.float32, -bound, bound)
        b = jax.random.uniform(kb, (fan_out,), jnp.float32, -bound, bound)
        return w, b

    w1, b1 = linear(ks[0], ks[1], input_dim, hidden_dim)      # fc1
    wc1, bc1 = linear(ks[2], ks[3], input_dim, hidden_dim)    # fc_comm1
    w2, b2 = linear(ks[4], ks[5], hidden_dim, hidden_dim)     # fc2
    wc2, bc2 = linear(ks[6], ks[7], hidden_dim, comm_dim)     # fc_comm2
    w3, b3 = linear(ks[8], ks[9], hidden_dim, 2)              # fc3
    wc3, bc3 = linear(ks[10], ks[11], 1, 2)                   # fc_comm3 (Linear(1, 2))
    return dict(w1=w1, b1=b1, wc1=wc1, bc1=bc1, w2=w2, b2=b2,
                wc2=wc2, bc2=bc2, w3=w3, b3=b3, wc3=wc3, bc3=bc3)


def pack_params(p):
    """Pack the 12 raw params into 4 kernel operands (bf16 weights, f32 tail)."""
    H = p['w2'].shape[0]
    C = p['wc2'].shape[1]

    w_s1 = jnp.concatenate([p['w1'], p['wc1']], axis=1).astype(jnp.bfloat16)   # (Din, 2H)

    w_s2 = jnp.zeros((2 * H, H + C), jnp.float32)
    w_s2 = w_s2.at[:H, :H].set(p['w2'])
    w_s2 = w_s2.at[H:, H:].set(p['wc2'])
    w_s2 = w_s2.astype(jnp.bfloat16)                                            # (2H, H+C)

    w3 = p['w3'].astype(jnp.bfloat16)                                           # (H, 2)

    W = max(2 * H, H + C, 2)

    def row(v):
        return jnp.pad(v, (0, W - v.shape[0]))

    tail = jnp.stack([
        row(jnp.concatenate([p['b1'], p['bc1']])),   # [b1 | bc1]
        row(jnp.concatenate([p['b2'], p['bc2']])),   # [b2 | bc2]
        row(p['b3']),                                # b3
        row(p['wc3'].reshape(-1)),                   # fc_comm3 weight (2 scalars)
        row(p['bc3']),                               # fc_comm3 bias   (2 scalars)
    ], axis=0).astype(jnp.float32)                                              # (5, W)

    return (w_s1, w_s2, w3, tail)


# ----------------------------------------------------------------------------- reference
def reference_forward(X, p, gumbel_noise, *, tanh_out=False):
    """Pure-JAX mirror of the PyTorch forward (same bf16-matmul / f32-accumulate
    numerics as the kernel, same explicit gumbel noise)."""
    def dot_bf16(a, w):
        return jnp.dot(a.astype(jnp.bfloat16), w.astype(jnp.bfloat16),
                       preferred_element_type=jnp.float32)

    h1 = jax.nn.relu(dot_bf16(X, p['w1']) + p['b1'])
    h1c = jax.nn.relu(dot_bf16(X, p['wc1']) + p['bc1'])
    h2 = jax.nn.relu(dot_bf16(h1, p['w2']) + p['b2'])
    h2c = jax.nn.relu(dot_bf16(h1c, p['wc2']) + p['bc2'])

    out_act = dot_bf16(h2, p['w3']) + p['b3']
    if tanh_out:
        out_act = jnp.tanh(out_act)

    # fc_comm3 applied to h2_comm.unsqueeze(-1): logits (B, C, 2), then tanh
    logits = jnp.tanh(h2c[:, :, None] * p['wc3'].reshape(2)[None, None, :]
                      + p['bc3'][None, None, :])
    C = h2c.shape[1]
    g = jnp.stack([gumbel_noise[:, :C], gumbel_noise[:, C:]], axis=-1)  # (B, C, 2)
    y = logits + g
    # hard gumbel-softmax -> one-hot(argmax); @ bin([0,1]) == indicator(argmax==1)
    out_comm = (y[..., 1] > y[..., 0]).astype(jnp.float32)
    return out_act, out_comm


# ----------------------------------------------------------------------------- main
if __name__ == "__main__":
    B = 2
    INPUT_DIM = 24
    HIDDEN_DIM = 32
    COMM_DIM = 4
    TANH_OUT = False   # module defaults: constrain_out=False, discrete_action=True

    key = jax.random.PRNGKey(0)
    kx, kp, kg = jax.random.split(key, 3)

    X = jax.random.normal(kx, (B, INPUT_DIM), dtype=jnp.float32)
    raw = init_params(kp, INPUT_DIM, HIDDEN_DIM, COMM_DIM)
    packed = pack_params(raw)
    gumbel_noise = jax.random.gumbel(kg, (B, 2 * COMM_DIM), dtype=jnp.float32)

    out_act, out_comm = jax.block_until_ready(
        mlp_policy_forward(X, gumbel_noise, packed, tanh_out=TANH_OUT))

    ref_act, ref_comm = reference_forward(X, raw, gumbel_noise, tanh_out=TANH_OUT)

    assert out_act.shape == (B, 2), out_act.shape
    assert out_comm.shape == (B, COMM_DIM), out_comm.shape
    assert jnp.allclose(out_act, ref_act, atol=1e-3, rtol=1e-3), (out_act, ref_act)
    assert bool(jnp.all((out_comm == 0.0) | (out_comm == 1.0)))
    assert jnp.array_equal(out_comm, ref_comm), (out_comm, ref_comm)

    print("KERNEL_OK")
</pallas_src>

<mosaic_0001>
module attributes {stable_mosaic.version = 11 : i64} {
  func.func @_mlp_policy_kernel(%arg0: i32, %arg1: memref<8x24xf32, #tpu.memory_space<vmem>>, %arg2: memref<8x8xf32, #tpu.memory_space<vmem>>, %arg3: memref<24x64xbf16, #tpu.memory_space<vmem>>, %arg4: memref<64x36xbf16, #tpu.memory_space<vmem>>, %arg5: memref<32x2xbf16, #tpu.memory_space<vmem>>, %arg6: memref<5x64xf32, #tpu.memory_space<vmem>>, %arg7: memref<8x2xf32, #tpu.memory_space<vmem>>, %arg8: memref<8x4xf32, #tpu.memory_space<vmem>>) attributes {dimension_semantics = [#tpu.dimension_semantics<parallel>], iteration_bounds = array<i64: 1>, scalar_prefetch = 0 : i64, scratch_operands = 0 : i64, tpu.core_type = #tpu.core_type<tc>, window_params = [{transform_indices = @transform_0, window_bounds = array<i64: 8, 24>}, {transform_indices = @transform_1, window_bounds = array<i64: 8, 8>}, {pipeline_mode = #tpu.pipeline_mode<synchronous>, transform_indices = @transform_2, window_bounds = array<i64: 24, 64>}, {pipeline_mode = #tpu.pipeline_mode<synchronous>, transform_indices = @transform_3, window_bounds = array<i64: 64, 36>}, {pipeline_mode = #tpu.pipeline_mode<synchronous>, transform_indices = @transform_4, window_bounds = array<i64: 32, 2>}, {pipeline_mode = #tpu.pipeline_mode<synchronous>, transform_indices = @transform_5, window_bounds = array<i64: 5, 64>}, {transform_indices = @transform_6, window_bounds = array<i64: 8, 2>}, {transform_indices = @transform_7, window_bounds = array<i64: 8, 4>}]} {
    %c0 = arith.constant 0 : index
    %c0_0 = arith.constant 0 : index
    %0 = vector.load %arg1[%c0, %c0_0] : memref<8x24xf32, #tpu.memory_space<vmem>>, vector<8x24xf32>
    %1 = arith.truncf %0 : vector<8x24xf32> to vector<8x24xbf16>
    %c0_1 = arith.constant 0 : index
    %c0_2 = arith.constant 0 : index
    %2 = vector.load %arg6[%c0_1, %c0_2] : memref<5x64xf32, #tpu.memory_space<vmem>>, vector<5x64xf32>
    %3 = vector.extract_strided_slice %2 {offsets = [0, 0], sizes = [1, 64], strides = [1, 1]} : vector<5x64xf32> to vector<1x64xf32>
    %4 = vector.extract_strided_slice %2 {offsets = [1, 0], sizes = [1, 36], strides = [1, 1]} : vector<5x64xf32> to vector<1x36xf32>
    %5 = vector.extract_strided_slice %2 {offsets = [2, 0], sizes = [1, 2], strides = [1, 1]} : vector<5x64xf32> to vector<1x2xf32>
    %6 = vector.extract_strided_slice %2 {offsets = [3, 0], sizes = [1, 2], strides = [1, 1]} : vector<5x64xf32> to vector<1x2xf32>
    %7 = vector.extract_strided_slice %2 {offsets = [4, 0], sizes = [1, 2], strides = [1, 1]} : vector<5x64xf32> to vector<1x2xf32>
    %c0_3 = arith.constant 0 : index
    %c0_4 = arith.constant 0 : index
    %8 = vector.load %arg3[%c0_3, %c0_4] : memref<24x64xbf16, #tpu.memory_space<vmem>>, vector<24x64xbf16>
    %cst = arith.constant dense<0.000000e+00> : vector<8x64xf32>
    %9 = tpu.matmul %1, %8, %cst {dimension_numbers = #tpu.dot_dimension_numbers<[1], [0], [0], [1], [0, 0, 1, 1], [], []>} : vector<8x24xbf16>, vector<24x64xbf16>, vector<8x64xf32> -> vector<8x64xf32>
    %10 = vector.broadcast %3 : vector<1x64xf32> to vector<8x64xf32>
    %11 = arith.addf %9, %10 : vector<8x64xf32>
    %cst_5 = arith.constant 0.000000e+00 : f32
    %12 = vector.broadcast %cst_5 : f32 to vector<8x64xf32>
    %13 = arith.maximumf %11, %12 : vector<8x64xf32>
    %14 = arith.truncf %13 : vector<8x64xf32> to vector<8x64xbf16>
    %c0_6 = arith.constant 0 : index
    %c0_7 = arith.constant 0 : index
    %15 = vector.load %arg4[%c0_6, %c0_7] : memref<64x36xbf16, #tpu.memory_space<vmem>>, vector<64x36xbf16>
    %cst_8 = arith.constant dense<0.000000e+00> : vector<8x36xf32>
    %16 = tpu.matmul %14, %15, %cst_8 {dimension_numbers = #tpu.dot_dimension_numbers<[1], [0], [0], [1], [0, 0, 1, 1], [], []>} : vector<8x64xbf16>, vector<64x36xbf16>, vector<8x36xf32> -> vector<8x36xf32>
    %17 = vector.broadcast %4 : vector<1x36xf32> to vector<8x36xf32>
    %18 = arith.addf %16, %17 : vector<8x36xf32>
    %cst_9 = arith.constant 0.000000e+00 : f32
    %19 = vector.broadcast %cst_9 : f32 to vector<8x36xf32>
    %20 = arith.maximumf %18, %19 : vector<8x36xf32>
    %21 = vector.extract_strided_slice %20 {offsets = [0, 0], sizes = [8, 32], strides = [1, 1]} : vector<8x36xf32> to vector<8x32xf32>
    %22 = vector.extract_strided_slice %20 {offsets = [0, 32], sizes = [8, 4], strides = [1, 1]} : vector<8x36xf32> to vector<8x4xf32>
    %23 = arith.truncf %21 : vector<8x32xf32> to vector<8x32xbf16>
    %c0_10 = arith.constant 0 : index
    %c0_11 = arith.constant 0 : index
    %24 = vector.load %arg5[%c0_10, %c0_11] : memref<32x2xbf16, #tpu.memory_space<vmem>>, vector<32x2xbf16>
    %cst_12 = arith.constant dense<0.000000e+00> : vector<8x2xf32>
    %25 = tpu.matmul %23, %24, %cst_12 {dimension_numbers = #tpu.dot_dimension_numbers<[1], [0], [0], [1], [0, 0, 1, 1], [], []>} : vector<8x32xbf16>, vector<32x2xbf16>, vector<8x2xf32> -> vector<8x2xf32>
    %26 = vector.broadcast %5 : vector<1x2xf32> to vector<8x2xf32>
    %27 = arith.addf %25, %26 : vector<8x2xf32>
    %28 = vector.extract_strided_slice %6 {offsets = [0, 0], sizes = [1, 1], strides = [1, 1]} : vector<1x2xf32> to vector<1x1xf32>
    %29 = vector.broadcast %28 : vector<1x1xf32> to vector<8x4xf32>
    %30 = arith.mulf %22, %29 : vector<8x4xf32>
    %31 = vector.extract_strided_slice %7 {offsets = [0, 0], sizes = [1, 1], strides = [1, 1]} : vector<1x2xf32> to vector<1x1xf32>
    %32 = vector.broadcast %31 : vector<1x1xf32> to vector<8x4xf32>
    %33 = arith.addf %30, %32 : vector<8x4xf32>
    %34 = math.tanh %33 : vector<8x4xf32>
    %35 = vector.extract_strided_slice %6 {offsets = [0, 1], sizes = [1, 1], strides = [1, 1]} : vector<1x2xf32> to vector<1x1xf32>
    %36 = vector.broadcast %35 : vector<1x1xf32> to vector<8x4xf32>
    %37 = arith.mulf %22, %36 : vector<8x4xf32>
    %38 = vector.extract_strided_slice %7 {offsets = [0, 1], sizes = [1, 1], strides = [1, 1]} : vector<1x2xf32> to vector<1x1xf32>
    %39 = vector.broadcast %38 : vector<1x1xf32> to vector<8x4xf32>
    %40 = arith.addf %37, %39 : vector<8x4xf32>
    %41 = math.tanh %40 : vector<8x4xf32>
    %c0_13 = arith.constant 0 : index
    %c0_14 = arith.constant 0 : index
    %42 = vector.load %arg2[%c0_13, %c0_14] : memref<8x8xf32, #tpu.memory_space<vmem>>, vector<8x8xf32>
    %43 = vector.extract_strided_slice %42 {offsets = [0, 0], sizes = [8, 4], strides = [1, 1]} : vector<8x8xf32> to vector<8x4xf32>
    %44 = vector.extract_strided_slice %42 {offsets = [0, 4], sizes = [8, 4], strides = [1, 1]} : vector<8x8xf32> to vector<8x4xf32>
    %45 = arith.addf %41, %44 : vector<8x4xf32>
    %46 = arith.addf %34, %43 : vector<8x4xf32>
    %47 = arith.cmpf ogt, %45, %46 : vector<8x4xf32>
    %cst_15 = arith.constant 1.000000e+00 : f32
    %cst_16 = arith.constant 0.000000e+00 : f32
    %48 = vector.broadcast %cst_15 : f32 to vector<8x4xf32>
    %49 = vector.broadcast %cst_16 : f32 to vector<8x4xf32>
    %50 = arith.select %47, %48, %49 : vector<8x4xi1>, vector<8x4xf32>
    %c0_17 = arith.constant 0 : index
    %c0_18 = arith.constant 0 : index
    %51 = vector.load %arg7[%c0_17, %c0_18] : memref<8x2xf32, #tpu.memory_space<vmem>>, vector<8x2xf32>
    tpu.vector_store %arg7[%c0_17, %c0_18], %27 {strides = array<i32>} : memref<8x2xf32, #tpu.memory_space<vmem>>, vector<8x2xf32>,
    %c0_19 = arith.constant 0 : index
    %c0_20 = arith.constant 0 : index
    %52 = vector.load %arg8[%c0_19, %c0_20] : memref<8x4xf32, #tpu.memory_space<vmem>>, vector<8x4xf32>
    tpu.vector_store %arg8[%c0_19, %c0_20], %50 {strides = array<i32>} : memref<8x4xf32, #tpu.memory_space<vmem>>, vector<8x4xf32>,
    return
  }
  func.func @transform_0(%arg0: i32) -> (i32, i32) {
    %c0_i32 = arith.constant 0 : i32
    %c0_i32_0 = arith.constant 0 : i32
    return %arg0, %c0_i32 : i32, i32
  }
  func.func @transform_1(%arg0: i32) -> (i32, i32) {
    %c0_i32 = arith.constant 0 : i32
    %c0_i32_0 = arith.constant 0 : i32
    return %arg0, %c0_i32 : i32, i32
  }
  func.func @transform_2(%arg0: i32) -> (i32, i32) {
    %c0_i32 = arith.constant 0 : i32
    %c0_i32_0 = arith.constant 0 : i32
    %c0_i32_1 = arith.constant 0 : i32
    return %c0_i32, %c0_i32_0 : i32, i32
  }
  func.func @transform_3(%arg0: i32) -> (i32, i32) {
    %c0_i32 = arith.constant 0 : i32
    %c0_i32_0 = arith.constant 0 : i32
    %c0_i32_1 = arith.constant 0 : i32
    return %c0_i32, %c0_i32_0 : i32, i32
  }
  func.func @transform_4(%arg0: i32) -> (i32, i32) {
    %c0_i32 = arith.constant 0 : i32
    %c0_i32_0 = arith.constant 0 : i32
    %c0_i32_1 = arith.constant 0 : i32
    return %c0_i32, %c0_i32_0 : i32, i32
  }
  func.func @transform_5(%arg0: i32) -> (i32, i32) {
    %c0_i32 = arith.constant 0 : i32
    %c0_i32_0 = arith.constant 0 : i32
    %c0_i32_1 = arith.constant 0 : i32
    return %c0_i32, %c0_i32_0 : i32, i32
  }
  func.func @transform_6(%arg0: i32) -> (i32, i32) {
    %c0_i32 = arith.constant 0 : i32
    %c0_i32_0 = arith.constant 0 : i32
    return %arg0, %c0_i32 : i32, i32
  }
  func.func @transform_7(%arg0: i32) -> (i32, i32) {
    %c0_i32 = arith.constant 0 : i32
    %c0_i32_0 = arith.constant 0 : i32
    return %arg0, %c0_i32 : i32, i32
  }
}

</mosaic_0001>

<bundles_post_ra>
// kernel: tpu_custom_call.1
= control target key start
LH: loop header
LB: loop body
LE: loop exit
PB: predicated region body
PF: predicated region fallthrough
CT: control target
= control target key end

     0   :  { %vm46_vm0 = vcmask 1043456   ;;  %s259_s9 = smov 127   ;;  %vm42_vm1 = vcmask 195584   ;;  %s261_s18 = smov 32   ;;  %vm98_vm2 = vcmask 523264   ;;  %vm134_vm3 = vcmask 261120   ;;  %s350_s2 = inlined_call_operand.vmem [shape: bf16[24,64], index: 2, kind: input, shape index: {}]   ;;  %s351_s5 = inlined_call_operand.vmem [shape: f32[5,64], index: 5, kind: input, shape index: {}]   ;;  %s352_s3 = inlined_call_operand.vmem [shape: bf16[64,36], index: 3, kind: input, shape index: {}]   ;;  %s353_s0 = inlined_call_operand.vmem [shape: f32[8,24], index: 0, kind: input, shape index: {}]   ;;  %s354_s1 = inlined_call_operand.vmem [shape: f32[8,8], index: 1, kind: input, shape index: {}]   ;;  %s355_s4 = inlined_call_operand.vmem [shape: bf16[32,2], index: 4, kind: input, shape index: {}]   ;;  %s356_s7 = inlined_call_operand.vmem [shape: f32[8,4], index: 7, kind: output, shape index: {1}]   ;;  %s357_s6 = inlined_call_operand.vmem [shape: f32[8,2], index: 6, kind: output, shape index: {0}]  }
   0x1   :  { %v31_v0 = vld [vmem:[%s350_s2 + $0x8] sm:$0xf]  ;;  %v310_v2 = vld [vmem:[%s351_s5] sm:$0x1f]  ;;  %v239_v3 = vld [vmem:[%s352_s3 + $0x18] sm:$0xff]  ;;  %v262_v45 = vmov 0.0  }
   0x2   :  { %v38_v1 = vunpack.c.l.b16 %v31_v0  ;;  %v152_v4 = vrot.slane %v310_v2, 3  ;;  %v157_v6 = vrot.slane %v310_v2, 4  ;;  %106 = vmatpush.bf16.msra.mxu1 %v239_v3  ;;  %v238_v7 = vld [vmem:[%s352_s3 + $0x10] sm:$0xff]  ;;  %v235_v9 = vld [vmem:[%s350_s2] sm:$0xff]  ;;  %v237_v12 = vld [vmem:[%s352_s3 + $0x8] sm:$0xff]  ;;  %v32_v17 = vperm.slane %v310_v2, 0 }
   0x3   :  { %v26_v10 = vld [vmem:[%s353_s0] sm:$0xff]  ;;  %s260_s0 = smov 28   ;;  %v241_v23 = vld [vmem:[%s355_s4 + $0x8] sm:$0xff]  ;;  %v73_v25 = vperm.slane %v310_v2, 1  ;;  %vm194_vm5 = vcmask 31744   ;;  %v121_v48 = vperm.slane %v310_v2, 2 }
   0x4   :  { %v40_v5 = vpack.c.b16 %v38_v1, %v38_v1  ;;  %163 = vrot.lane.b32.xlu0 %v152_v4, %s259_s9  ;;  %242 = vpush %v152_v4  ;;  %v27_v11 = vpack.c.bf16 %v26_v10, %v26_v10  ;;  %v236_v13 = vld [vmem:[%s352_s3] sm:$0xff]  ;;  %144 = vmatpush.bf16.msra.mxu2 %v241_v23  ;;  %vm188_vm6 = vcmask 15360  }
   0x5   :  { %244 = vpush %v157_v6  ;;  %v176_v14 = vld [vmem:[%s354_s1] sm:$0xff] }
   0x6   :  { %v48_v8 = vsel %vm46_vm0, %v40_v5, 0  ;;  %107 = vmatpush.bf16.msra.mxu1 %v238_v7  ;;  %178 = vrot.lane.b32.xlu1 %v176_v14, %s260_s0  ;;  %v240_v24 = vld [vmem:[%s355_s4] sm:$0xff]  ;;  %s263_s4 = smov 96  }
   0x7   :  { %56 = vmatpush.bf16.msra.mxu0 %v48_v8 }
   0x8   :  { %145 = vmatpush.bf16.msra.mxu2 %v240_v24 }
   0xa   :  { %108 = vmatpush.bf16.msra.mxu1 %v237_v12 }
   0xb   :  { %57 = vmatpush.bf16.msra.mxu0 %v235_v9 }
   0xc   :  { %169 = vrot.lane.b32.xlu0 %v157_v6, %s259_s9 }
   0xe   :  { %208 = vmatmul.msk.bf16.vlgmr.msra.gmra.mxu0 %vm42_vm1, %v27_v11  ;;  %109 = vmatpush.bf16.msra.mxu1 %v236_v13 }
   0xf   :  { %182 = vrot.lane.b32.xlu1 %v176_v14, %s261_s18 }
  0x35   :  { %s243_s21 = spop %242 }
  0x36   :  { %s245_s22 = spop %244  ;;  %v154_v28 = vstv %s243_s21 }
  0x37   :  { %v159_v32 = vstv %s245_s22 }
  0x76   :  { %v164_v15 = vpop.permute.xlu0 %163 }
  0x77   :  { %246 = vpush %v164_v15 }
  0x78   :  { %v179_v31 = vpop.permute.xlu1 %178 }
  0x7e   :  { %v170_v16 = vpop.permute.xlu0 %169 }
  0x7f   :  { %248 = vpush %v170_v16 }
  0x81   :  { %v183_v40 = vpop.permute.xlu1 %182 }
  0x8b   :  { %v59_v18 = vpop.f32.mrf.mxu0 }
  0x8c   :  { %v60_v19 = vadd.f32 %v59_v18, %v32_v17 }
  0x8e   :  { %v63_v20 = vmax.f32 %v60_v19, 0.0 }
  0x90   :  { %v64_v21 = vpack.c.bf16 %v63_v20, %v63_v20 }
  0x92   :  { %225 = vmatmul.msk.bf16.vlgmr.msra.gmra.mxu1 %vm98_vm2, %v64_v21 }
  0x93   :  { %v61_v22 = vpop.f32.mrf.mxu0 }
  0xa8   :  { %s247_s23 = spop %246 }
  0xa9   :  { %v166_v29 = vstv %s247_s23 }
  0xb0   :  { %s249_s24 = spop %248 }
  0xb1   :  { %v172_v33 = vstv %s249_s24 }
 0x10f   :  { %v111_v26 = vpop.f32.mrf.mxu1 }
 0x110   :  { %v112_v27 = vadd.f32 %v111_v26, %v73_v25 }
 0x112   :  { %v115_v30 = vmax.f32 %v112_v27, 0.0 }
 0x114   :  { %v156_v34 = vmul.f32 %v154_v28, %v115_v30  ;;  %v168_v35 = vmul.f32 %v166_v29, %v115_v30  ;;  %v116_v36 = vpack.c.bf16 %v115_v30, %v115_v30 }
 0x116   :  { %v161_v37 = vadd.f32 %v159_v32, %v156_v34  ;;  %v174_v38 = vadd.f32 %v172_v33, %v168_v35  ;;  %234 = vmatmul.msk.bf16.vlgmr.msra.gmra.mxu2 %vm134_vm3, %v116_v36 }
 0x117   :  { %v113_v39 = vpop.f32.mrf.mxu1 }
 0x118   :  { %255 = vtanh.f32 %v161_v37 }
 0x119   :  { %257 = vtanh.f32 %v174_v38 }
 0x11e   :  { %v256_v41 = vpop.eup %255 }
 0x11f   :  { %v258_v42 = vpop.eup %257  ;;  %v185_v43 = vadd.f32 %v256_v41, %v183_v40 }
 0x120   :  { %v181_v44 = vadd.f32 %v258_v42, %v179_v31 }
 0x122   :  { %vm186_vm4 = vcmp.gt.f32.partialorder %v181_v44, %v185_v43 }
 0x123   :  { %v187_v46 = vsel %vm186_vm4, 1.0, %v262_v45 }
 0x124   :  { %191 = vrot.lane.b32.xlu2 %v187_v46, %s263_s4 }
 0x17e   :  { %v192_v47 = vpop.permute.xlu2 %191 }
 0x17f   :  { %195 = vst.msk [vmem:[%s356_s7] sm:$0xff] %vm194_vm5, %v192_v47 }
 0x199   :  { %v147_v49 = vpop.f32.mrf.mxu2 }
 0x19a   :  { %v148_v50 = vadd.f32 %v147_v49, %v121_v48 }
 0x19c   :  { %189 = vst.msk [vmem:[%s357_s6] sm:$0xff] %vm188_vm6, %v148_v50 }
 0x1a1   :  { %v149_v51 = vpop.f32.mrf.mxu2 }

</bundles_post_ra>
